<compile_context>
chip_gen: v7x
topology: tpu7x:2x2x1
jax: 0.10.0
libtpu: 0.0.40
codegen_flags: <defaults>
</compile_context>

<pallas_src>
import numpy as np
import jax
import jax.numpy as jnp
from jax import lax
from jax.experimental import pallas as pl
from jax.experimental.pallas import tpu as pltpu  # noqa: F401  (namespace available)


def _shift_down(a, k, fill, T, BP):
    """Shift rows toward higher time index by k; first k rows become `fill`."""
    filler = jnp.full((k, BP), fill, jnp.float32)
    return jnp.concatenate([filler, a[: T - k, :]], axis=0)


def _shift_up(a, k, fill, T, BP):
    """Shift rows toward lower time index by k; last k rows become `fill`."""
    filler = jnp.full((k, BP), fill, jnp.float32)
    return jnp.concatenate([a[k:, :], filler], axis=0)


def midas_core_kernel(x_ref, m_ref, inp_ref, df_ref, db_ref, err_cnt_ref):
    # x_ref : [T, 6*B*P]  feature-major player data (lane = f*B*P + b*P + p)
    # m_ref : [T, B*P]    observation mask (1 = observed), lane = b*P + p
    x = x_ref[...]
    m = m_ref[...]
    T, BP = m.shape

    # ---- torch.repeat_interleave(mask, 6, dim=-1): in the feature-major layout
    #      this is a 6x lane tile (pure vector concat, no MXU, no constants) ----
    m_rep = jnp.concatenate([m] * 6, axis=1)            # [T, 6*B*P]

    # ---- ret['input'] = player_data * mask ----
    inp = x * m_rep
    inp_ref[...] = inp

    # ---- compute_deltas(mask): closed form, fully vectorized over (b, p) lanes ----
    t_idx = lax.broadcasted_iota(jnp.int32, (T, BP), 0).astype(jnp.float32)
    last = jnp.float32(T - 1)

    # forward:  df[t] = t - max_{s < t} s*m[s]   (exclusive prefix max, fill 0)
    obs_f = t_idx * m
    pm = _shift_down(obs_f, 1, 0.0, T, BP)
    shift = 1
    while shift < T:                                    # log2(T) whole-array steps
        pm = jnp.maximum(pm, _shift_down(pm, shift, 0.0, T, BP))
        shift *= 2
    df_ref[...] = t_idx - pm

    # backward: db[t] = min_{s > t} (s if m[s] else T-1) - t  (exclusive suffix min)
    obs_b = t_idx * m + last * (1.0 - m)
    sm = _shift_up(obs_b, 1, last, T, BP)
    shift = 1
    while shift < T:
        sm = jnp.minimum(sm, _shift_up(sm, shift, last, T, BP))
        shift *= 2
    db_ref[...] = sm - t_idx

    # ---- calc_pos_error pieces (masked xy-distance sum + missing count) ----
    # TODO(synk): pred = inner MIDASImputer output; zero-imputed input stands in.
    pred = inp
    diff2 = (pred - x) * (pred - x)                     # [T, 6*B*P]
    # x/y squared components occupy lanes [0:BP) and [BP:2BP) in this layout.
    sq = diff2[:, :BP] + diff2[:, BP:2 * BP]            # [T, B*P]
    missing = 1.0 - m
    # note: sqrt of exact zeros is fine in forward (would need masking for a VJP)
    dist = jnp.sqrt(sq) * missing
    err_cnt_ref[...] = jnp.concatenate(
        [jnp.sum(dist).reshape(1, 1), jnp.sum(missing).reshape(1, 1)], axis=1)


def midas_forward(player_data, mask):
    """Pallas implementation of the MIDAS.forward data path (train mode,
    player_order=None, missing_pattern != 'forecast')."""
    B, T, F = player_data.shape
    P = mask.shape[-1]
    assert F == 6 * P, "each player carries 6 features (x, y, vx, vy, ax, ay)"
    BP = B * P
    L = 6 * BP

    # Lane-dense feature-major relayout (layout plumbing, done once in XLA):
    #   x -> [T, 6*B*P] with lane = f*B*P + b*P + p ;  mask -> [T, B*P]
    x_k = player_data.reshape(B, T, P, 6).transpose(1, 3, 0, 2).reshape(T, L)
    m_k = mask.transpose(1, 0, 2).reshape(T, BP)

    inp_k, df_k, db_k, err_cnt = pl.pallas_call(
        midas_core_kernel,
        out_shape=(
            jax.ShapeDtypeStruct((T, L), jnp.float32),   # masked input
            jax.ShapeDtypeStruct((T, BP), jnp.float32),  # deltas_f
            jax.ShapeDtypeStruct((T, BP), jnp.float32),  # deltas_b
            jax.ShapeDtypeStruct((1, 2), jnp.float32),   # [pos-error sum, missing count]
        ),
    )(x_k, m_k)

    # Restore the torch layouts in the wrapper.
    inp = inp_k.reshape(T, 6, B, P).transpose(2, 0, 3, 1).reshape(B, T, F)
    df = df_k.reshape(T, B, P).transpose(1, 0, 2)
    db = db_k.reshape(T, B, P).transpose(1, 0, 2)

    # ret['mask'] = repeat_interleave(mask, 6): cheap XLA repeat downstream —
    # avoids a second full-size [B,T,F] HBM write from the kernel.
    mask_rep = jnp.repeat(mask, 6, axis=-1)

    # aggfunc='mean' in train mode: mean over all missing (player, time) entries.
    pred_pe = err_cnt[0, 0] / jnp.maximum(err_cnt[0, 1], 1.0)

    ret = {
        "target": player_data,
        "mask": mask_rep,
        "input": inp,
        "deltas_f": df,
        "deltas_b": db,
        "pred": inp,            # TODO(synk): inner imputer network output
        "pred_pe": pred_pe,
        "missing_rate": 0.5,    # TODO(synk): host-side RNG missing-rate draw
    }
    return ret


if __name__ == "__main__":
    # Small, MIDAS-consistent shapes: B=2 sequences, T=16 frames,
    # P=4 players (single_team, team_size=4), 6 features per player -> F=24.
    B, T, P = 2, 16, 4
    F = 6 * P

    key = jax.random.PRNGKey(0)
    k_x, k_m = jax.random.split(key)
    player_data = jax.random.normal(k_x, (B, T, F), dtype=jnp.float32)
    # Deterministic stand-in for generate_mask (uniform pattern, missing_rate=0.5):
    mask = (jax.random.uniform(k_m, (B, T, P)) > 0.5).astype(jnp.float32)

    ret = midas_forward(player_data, mask)
    jax.block_until_ready(ret["pred_pe"])

    # ---- lightweight numpy reference check ----
    x_np = np.asarray(player_data)
    m_np = np.asarray(mask)
    mrep_ref = np.repeat(m_np, 6, axis=-1)
    inp_ref = x_np * mrep_ref
    df_ref = np.zeros_like(m_np)
    for t in range(1, T):
        df_ref[:, t] = 1.0 + (1.0 - m_np[:, t - 1]) * df_ref[:, t - 1]
    db_ref = np.zeros_like(m_np)
    for t in range(T - 2, -1, -1):
        db_ref[:, t] = 1.0 + (1.0 - m_np[:, t + 1]) * db_ref[:, t + 1]
    diff2 = (inp_ref - x_np) ** 2
    diff2 = diff2.reshape(B, T, P, 6)
    dist = np.sqrt(diff2[..., 0] + diff2[..., 1])
    missing = 1.0 - m_np
    pe_ref = (dist * missing).sum() / max(missing.sum(), 1.0)

    assert np.allclose(np.asarray(ret["mask"]), mrep_ref, atol=1e-5)
    assert np.allclose(np.asarray(ret["input"]), inp_ref, atol=1e-5)
    assert np.allclose(np.asarray(ret["deltas_f"]), df_ref, atol=1e-5)
    assert np.allclose(np.asarray(ret["deltas_b"]), db_ref, atol=1e-5)
    assert np.allclose(float(ret["pred_pe"]), pe_ref, atol=1e-4)

    print("KERNEL_OK")
</pallas_src>

<mosaic_0001>
module attributes {stable_mosaic.version = 11 : i64} {
  func.func @midas_core_kernel(%arg0: memref<16x48xf32, #tpu.memory_space<vmem>>, %arg1: memref<16x8xf32, #tpu.memory_space<vmem>>, %arg2: memref<16x48xf32, #tpu.memory_space<vmem>>, %arg3: memref<16x8xf32, #tpu.memory_space<vmem>>, %arg4: memref<16x8xf32, #tpu.memory_space<vmem>>, %arg5: memref<1x2xf32, #tpu.memory_space<vmem>>) attributes {dimension_semantics = [], scalar_prefetch = 0 : i64, scratch_operands = 0 : i64, tpu.core_type = #tpu.core_type<tc>} {
    %c0 = arith.constant 0 : index
    %c0_0 = arith.constant 0 : index
    %0 = vector.load %arg0[%c0, %c0_0] : memref<16x48xf32, #tpu.memory_space<vmem>>, vector<16x48xf32>
    %c0_1 = arith.constant 0 : index
    %c0_2 = arith.constant 0 : index
    %1 = vector.load %arg1[%c0_1, %c0_2] : memref<16x8xf32, #tpu.memory_space<vmem>>, vector<16x8xf32>
    %2 = tpu.concatenate %1, %1, %1, %1, %1, %1 in 1 : vector<16x8xf32>, vector<16x8xf32>, vector<16x8xf32>, vector<16x8xf32>, vector<16x8xf32>, vector<16x8xf32> -> vector<16x48xf32>
    %3 = arith.mulf %0, %2 : vector<16x48xf32>
    %c0_3 = arith.constant 0 : index
    %c0_4 = arith.constant 0 : index
    %4 = vector.load %arg2[%c0_3, %c0_4] : memref<16x48xf32, #tpu.memory_space<vmem>>, vector<16x48xf32>
    tpu.vector_store %arg2[%c0_3, %c0_4], %3 {strides = array<i32>} : memref<16x48xf32, #tpu.memory_space<vmem>>, vector<16x48xf32>,
    %5 = tpu.iota {dimensions = array<i32: 0>} : vector<16x8xi32>
    %6 = arith.sitofp %5 : vector<16x8xi32> to vector<16x8xf32>
    %7 = arith.mulf %6, %1 : vector<16x8xf32>
    %cst = arith.constant 0.000000e+00 : f32
    %8 = vector.broadcast %cst : f32 to vector<1x8xf32>
    %9 = vector.extract_strided_slice %7 {offsets = [0, 0], sizes = [15, 8], strides = [1, 1]} : vector<16x8xf32> to vector<15x8xf32>
    %10 = tpu.concatenate %8, %9 in 0 : vector<1x8xf32>, vector<15x8xf32> -> vector<16x8xf32>
    %cst_5 = arith.constant 0.000000e+00 : f32
    %11 = vector.broadcast %cst_5 : f32 to vector<1x8xf32>
    %12 = vector.extract_strided_slice %10 {offsets = [0, 0], sizes = [15, 8], strides = [1, 1]} : vector<16x8xf32> to vector<15x8xf32>
    %13 = tpu.concatenate %11, %12 in 0 : vector<1x8xf32>, vector<15x8xf32> -> vector<16x8xf32>
    %14 = arith.maximumf %10, %13 : vector<16x8xf32>
    %cst_6 = arith.constant 0.000000e+00 : f32
    %15 = vector.broadcast %cst_6 : f32 to vector<2x8xf32>
    %16 = vector.extract_strided_slice %14 {offsets = [0, 0], sizes = [14, 8], strides = [1, 1]} : vector<16x8xf32> to vector<14x8xf32>
    %17 = tpu.concatenate %15, %16 in 0 : vector<2x8xf32>, vector<14x8xf32> -> vector<16x8xf32>
    %18 = arith.maximumf %14, %17 : vector<16x8xf32>
    %cst_7 = arith.constant 0.000000e+00 : f32
    %19 = vector.broadcast %cst_7 : f32 to vector<4x8xf32>
    %20 = vector.extract_strided_slice %18 {offsets = [0, 0], sizes = [12, 8], strides = [1, 1]} : vector<16x8xf32> to vector<12x8xf32>
    %21 = tpu.concatenate %19, %20 in 0 : vector<4x8xf32>, vector<12x8xf32> -> vector<16x8xf32>
    %22 = arith.maximumf %18, %21 : vector<16x8xf32>
    %cst_8 = arith.constant 0.000000e+00 : f32
    %23 = vector.broadcast %cst_8 : f32 to vector<8x8xf32>
    %24 = vector.extract_strided_slice %22 {offsets = [0, 0], sizes = [8, 8], strides = [1, 1]} : vector<16x8xf32> to vector<8x8xf32>
    %25 = tpu.concatenate %23, %24 in 0 : vector<8x8xf32>, vector<8x8xf32> -> vector<16x8xf32>
    %26 = arith.maximumf %22, %25 : vector<16x8xf32>
    %27 = arith.subf %6, %26 : vector<16x8xf32>
    %c0_9 = arith.constant 0 : index
    %c0_10 = arith.constant 0 : index
    %28 = vector.load %arg3[%c0_9, %c0_10] : memref<16x8xf32, #tpu.memory_space<vmem>>, vector<16x8xf32>
    tpu.vector_store %arg3[%c0_9, %c0_10], %27 {strides = array<i32>} : memref<16x8xf32, #tpu.memory_space<vmem>>, vector<16x8xf32>,
    %29 = arith.mulf %6, %1 : vector<16x8xf32>
    %cst_11 = arith.constant 1.000000e+00 : f32
    %30 = vector.broadcast %cst_11 : f32 to vector<16x8xf32>
    %31 = arith.subf %30, %1 : vector<16x8xf32>
    %cst_12 = arith.constant 1.500000e+01 : f32
    %32 = vector.broadcast %cst_12 : f32 to vector<16x8xf32>
    %33 = arith.mulf %32, %31 : vector<16x8xf32>
    %34 = arith.addf %29, %33 : vector<16x8xf32>
    %cst_13 = arith.constant 1.500000e+01 : f32
    %35 = vector.broadcast %cst_13 : f32 to vector<1x8xf32>
    %36 = vector.extract_strided_slice %34 {offsets = [1, 0], sizes = [15, 8], strides = [1, 1]} : vector<16x8xf32> to vector<15x8xf32>
    %37 = tpu.concatenate %36, %35 in 0 : vector<15x8xf32>, vector<1x8xf32> -> vector<16x8xf32>
    %cst_14 = arith.constant 1.500000e+01 : f32
    %38 = vector.broadcast %cst_14 : f32 to vector<1x8xf32>
    %39 = vector.extract_strided_slice %37 {offsets = [1, 0], sizes = [15, 8], strides = [1, 1]} : vector<16x8xf32> to vector<15x8xf32>
    %40 = tpu.concatenate %39, %38 in 0 : vector<15x8xf32>, vector<1x8xf32> -> vector<16x8xf32>
    %41 = arith.minimumf %37, %40 : vector<16x8xf32>
    %cst_15 = arith.constant 1.500000e+01 : f32
    %42 = vector.broadcast %cst_15 : f32 to vector<2x8xf32>
    %43 = vector.extract_strided_slice %41 {offsets = [2, 0], sizes = [14, 8], strides = [1, 1]} : vector<16x8xf32> to vector<14x8xf32>
    %44 = tpu.concatenate %43, %42 in 0 : vector<14x8xf32>, vector<2x8xf32> -> vector<16x8xf32>
    %45 = arith.minimumf %41, %44 : vector<16x8xf32>
    %cst_16 = arith.constant 1.500000e+01 : f32
    %46 = vector.broadcast %cst_16 : f32 to vector<4x8xf32>
    %47 = vector.extract_strided_slice %45 {offsets = [4, 0], sizes = [12, 8], strides = [1, 1]} : vector<16x8xf32> to vector<12x8xf32>
    %48 = tpu.concatenate %47, %46 in 0 : vector<12x8xf32>, vector<4x8xf32> -> vector<16x8xf32>
    %49 = arith.minimumf %45, %48 : vector<16x8xf32>
    %cst_17 = arith.constant 1.500000e+01 : f32
    %50 = vector.broadcast %cst_17 : f32 to vector<8x8xf32>
    %51 = vector.extract_strided_slice %49 {offsets = [8, 0], sizes = [8, 8], strides = [1, 1]} : vector<16x8xf32> to vector<8x8xf32>
    %52 = tpu.concatenate %51, %50 in 0 : vector<8x8xf32>, vector<8x8xf32> -> vector<16x8xf32>
    %53 = arith.minimumf %49, %52 : vector<16x8xf32>
    %54 = arith.subf %53, %6 : vector<16x8xf32>
    %c0_18 = arith.constant 0 : index
    %c0_19 = arith.constant 0 : index
    %55 = vector.load %arg4[%c0_18, %c0_19] : memref<16x8xf32, #tpu.memory_space<vmem>>, vector<16x8xf32>
    tpu.vector_store %arg4[%c0_18, %c0_19], %54 {strides = array<i32>} : memref<16x8xf32, #tpu.memory_space<vmem>>, vector<16x8xf32>,
    %56 = arith.subf %3, %0 : vector<16x48xf32>
    %57 = arith.subf %3, %0 : vector<16x48xf32>
    %58 = arith.mulf %56, %57 : vector<16x48xf32>
    %59 = vector.extract_strided_slice %58 {offsets = [0, 0], sizes = [16, 8], strides = [1, 1]} : vector<16x48xf32> to vector<16x8xf32>
    %60 = vector.extract_strided_slice %58 {offsets = [0, 8], sizes = [16, 8], strides = [1, 1]} : vector<16x48xf32> to vector<16x8xf32>
    %61 = arith.addf %59, %60 : vector<16x8xf32>
    %cst_20 = arith.constant 1.000000e+00 : f32
    %62 = vector.broadcast %cst_20 : f32 to vector<16x8xf32>
    %63 = arith.subf %62, %1 : vector<16x8xf32>
    %64 = math.sqrt %61 : vector<16x8xf32>
    %65 = arith.mulf %64, %63 : vector<16x8xf32>
    %66 = vector.shape_cast %65 : vector<16x8xf32> to vector<1x16x8xf32>
    %cst_21 = arith.constant dense<0.000000e+00> : vector<1xf32>
    %67 = vector.multi_reduction <add>, %66, %cst_21 [1, 2] : vector<1x16x8xf32> to vector<1xf32>
    %68 = vector.shape_cast %67 : vector<1xf32> to vector<1x1x1xf32>
    %69 = vector.extract %68[0, 0, 0] : f32 from vector<1x1x1xf32>
    %70 = vector.broadcast %69 : f32 to vector<1x1xf32>
    %71 = vector.shape_cast %63 : vector<16x8xf32> to vector<1x16x8xf32>
    %cst_22 = arith.constant dense<0.000000e+00> : vector<1xf32>
    %72 = vector.multi_reduction <add>, %71, %cst_22 [1, 2] : vector<1x16x8xf32> to vector<1xf32>
    %73 = vector.shape_cast %72 : vector<1xf32> to vector<1x1x1xf32>
    %74 = vector.extract %73[0, 0, 0] : f32 from vector<1x1x1xf32>
    %75 = vector.broadcast %74 : f32 to vector<1x1xf32>
    %76 = tpu.concatenate %70, %75 in 1 : vector<1x1xf32>, vector<1x1xf32> -> vector<1x2xf32>
    %c0_23 = arith.constant 0 : index
    %c0_24 = arith.constant 0 : index
    %77 = vector.load %arg5[%c0_23, %c0_24] : memref<1x2xf32, #tpu.memory_space<vmem>>, vector<1x2xf32>
    tpu.vector_store %arg5[%c0_23, %c0_24], %76 {strides = array<i32>} : memref<1x2xf32, #tpu.memory_space<vmem>>, vector<1x2xf32>,
    return
  }
}

</mosaic_0001>

<bundles_post_ra>
// kernel: tpu_custom_call.1
= control target key start
LH: loop header
LB: loop body
LE: loop exit
PB: predicated region body
PF: predicated region fallthrough
CT: control target
= control target key end

     0   :  { %11 = vsyncpa [#allocation3], 0  ;;  %s340_s20 = smov 16   ;;  %s341_s21 = smov 8   ;;  %s480_s0 = inlined_call_operand.vmem [shape: f32[16,48], index: 0, kind: input, shape index: {}]   ;;  %s481_s1 = inlined_call_operand.vmem [shape: f32[16,8], index: 1, kind: input, shape index: {}]   ;;  %s482_s2 = inlined_call_operand.hbm [shape: f32[16,48], index: 2, kind: output, shape index: {0}]   ;;  %s483_s3 = inlined_call_operand.vmem [shape: f32[16,8], index: 3, kind: output, shape index: {1}]   ;;  %s484_s4 = inlined_call_operand.vmem [shape: f32[16,8], index: 4, kind: output, shape index: {2}]   ;;  %s485_s5 = inlined_call_operand.hbm [shape: f32[1,2], index: 5, kind: output, shape index: {3}]  }
   0x1   :  { %v19_v0 = vld [vmem:[%s481_s1] sm:$0xff]  ;;  %v20_v1 = vld [vmem:[%s481_s1 + $0x8] sm:$0xff] }
   0x2   :  { %29 = vrot.lane.b32.xlu1 %v19_v0, %s340_s20  ;;  %23 = vrot.lane.b32.xlu0 %v19_v0, %s341_s21 }
   0x3   :  { %12 = vsyncpa [#allocation5], 0  ;;  %s342_s24 = smov 24   ;;  %s343_s25 = smov 32   ;;  %vm53_vm0 = vcmask 64512   ;;  %vm56_vm1 = vcmask 130048   ;;  %v73_v14 = vlaneseq }
   0x4   :  { %s344_s26 = smov 40   ;;  %vm59_vm2 = vcmask 195584   ;;  %vm62_vm3 = vcmask 261120   ;;  %vm65_vm4 = vcmask 326656   ;;  %v18_v17 = vld [vmem:[%s480_s0 + $0x8] sm:$0xff]  ;;  %v17_v18 = vld [vmem:[%s480_s0] sm:$0xff] }
   0x5   :  { %vm70_vm5 = vcmask 392192   ;;  %v74_v23 = vshrl.u32 %v73_v14, 7  ;;  %v395_v26 = vsub.f32 1.0, %v19_v0  ;;  %v397_v27 = vsub.f32 1.0, %v20_v1  ;;  %s345_s0 = smov 120  }
   0x6   :  { %31 = vrot.lane.b32.xlu1 %v20_v1, %s340_s20  ;;  %25 = vrot.lane.b32.xlu0 %v20_v1, %s341_s21  ;;  %vm82_vm6 = vcmask 1040384   ;;  %vm134_vm7 = vcmask 1046528   ;;  %vm100_vm8 = vcmask 1041408   ;;  %vm152_vm9 = vcmask 1045504  }
   0x7   :  { %v75_v30 = vadd.s32 8, %v74_v23  ;;  %v399_v31 = vcvt.s32.f32 %v74_v23  ;;  %v128_v32 = vmul.f32 15.0, %v395_v26  ;;  %v129_v33 = vmul.f32 15.0, %v397_v27 }
   0x8   :  { %vm111_vm10 = vcmask 1043456  }
   0x9   :  { %v403_v36 = vcvt.s32.f32 %v75_v30  ;;  %v78_v37 = vmul.f32 %v399_v31, %v19_v0 }
   0xa   :  { %37 = vrot.lane.b32.xlu1 %v20_v1, %s342_s24  ;;  %35 = vrot.lane.b32.xlu0 %v19_v0, %s342_s24 }
   0xb   :  { %v79_v40 = vmul.f32 %v403_v36, %v20_v1  ;;  %v83_v41 = vrot.slane %v78_v37, 7  ;;  %v130_v42 = vadd.f32 %v128_v32, %v78_v37 }
   0xd   :  { %v84_v43 = vrot.slane %v79_v40, 7  ;;  %v88_v44 = vsel %vm82_vm6, 0.0, %v83_v41  ;;  %v131_v45 = vadd.f32 %v129_v33, %v79_v40  ;;  %v135_v47 = vrot.slane %v130_v42, 1 }
   0xe   :  { %43 = vrot.lane.b32.xlu1 %v20_v1, %s343_s25  ;;  %41 = vrot.lane.b32.xlu0 %v19_v0, %s343_s25  ;;  %v90_v46 = vrot.slane %v88_v44, 7 }
   0xf   :  { %v85_v48 = vsel %vm82_vm6, %v83_v41, %v84_v43  ;;  %v136_v49 = vrot.slane %v131_v45, 1 }
  0x10   :  { %v91_v50 = vrot.slane %v85_v48, 7  ;;  %v95_v51 = vsel %vm82_vm6, 0.0, %v90_v46 }
  0x11   :  { %v96_v52 = vmax.f32 %v88_v44, %v95_v51  ;;  %v137_v53 = vsel %vm134_vm7, %v135_v47, %v136_v49  ;;  %v140_v54 = vsel %vm134_vm7, %v136_v49, 15.0 }
  0x12   :  { %49 = vrot.lane.b32.xlu1 %v20_v1, %s344_s26  ;;  %47 = vrot.lane.b32.xlu0 %v19_v0, %s344_s26  ;;  %v92_v55 = vsel %vm82_vm6, %v90_v46, %v91_v50  ;;  %v142_v56 = vrot.slane %v137_v53, 1  ;;  %v143_v57 = vrot.slane %v140_v54, 1 }
  0x13   :  { %v97_v58 = vmax.f32 %v85_v48, %v92_v55  ;;  %v101_v59 = vrot.slane %v96_v52, 6 }
  0x14   :  { %v144_v60 = vsel %vm134_vm7, %v142_v56, %v143_v57  ;;  %v147_v61 = vsel %vm134_vm7, %v143_v57, 15.0 }
  0x15   :  { %v102_v62 = vrot.slane %v97_v58, 6  ;;  %v106_v63 = vsel %vm100_vm8, 0.0, %v101_v59 }
  0x74   :  { %v30_v2 = vpop.permute.xlu1 %29  ;;  %v24_v3 = vpop.permute.xlu0 %23 }
  0x75   :  { %v54_v8 = vsel %vm53_vm0, %v19_v0, %v24_v3  ;;  %v148_v0 = vmin.f32 %v137_v53, %v144_v60  ;;  %v103_v3 = vsel %vm100_vm8, %v101_v59, %v102_v62 }
  0x76   :  { %v57_v13 = vsel %vm56_vm1, %v54_v8, %v30_v2  ;;  %v107_v2 = vmax.f32 %v96_v52, %v106_v63 }
  0x78   :  { %v32_v4 = vpop.permute.xlu1 %31  ;;  %v26_v5 = vpop.permute.xlu0 %25 }
  0x79   :  { %v55_v9 = vsel %vm53_vm0, %v20_v1, %v26_v5  ;;  %v149_v1 = vmin.f32 %v140_v54, %v147_v61 }
  0x7a   :  { %v58_v12 = vsel %vm56_vm1, %v55_v9, %v32_v4  ;;  %v153_v4 = vrot.slane %v148_v0, 2 }
  0x7b   :  { %v154_v5 = vrot.slane %v149_v1, 2 }
  0x7c   :  { %v38_v6 = vpop.permute.xlu1 %37  ;;  %v36_v7 = vpop.permute.xlu0 %35 }
  0x7d   :  { %v61_v15 = vsel %vm59_vm2, %v58_v12, %v38_v6  ;;  %v60_v16 = vsel %vm59_vm2, %v57_v13, %v36_v7  ;;  %v108_v6 = vmax.f32 %v97_v58, %v103_v3  ;;  %v112_v7 = vrot.slane %v107_v2, 4 }
  0x7e   :  { %v155_v8 = vsel %vm152_vm9, %v153_v4, %v154_v5  ;;  %v158_v9 = vsel %vm152_vm9, %v154_v5, 15.0 }
  0x7f   :  { %v159_v12 = vmin.f32 %v148_v0, %v155_v8  ;;  %v160_v13 = vmin.f32 %v149_v1, %v158_v9 }
  0x80   :  { %v44_v10 = vpop.permute.xlu1 %43  ;;  %v42_v11 = vpop.permute.xlu0 %41 }
  0x81   :  { %v64_v19 = vsel %vm62_vm3, %v61_v15, %v44_v10  ;;  %v63_v20 = vsel %vm62_vm3, %v60_v16, %v42_v11  ;;  %v113_v10 = vrot.slane %v108_v6, 4  ;;  %v117_v11 = vsel %vm111_vm10, 0.0, %v112_v7 }
  0x82   :  { %v118_v14 = vmax.f32 %v107_v2, %v117_v11  ;;  %v163_v16 = vrot.slane %v159_v12, 4 }
  0x83   :  { %v114_v15 = vsel %vm111_vm10, %v112_v7, %v113_v10 }
  0x84   :  { %v50_v21 = vpop.permute.xlu1 %49  ;;  %v48_v22 = vpop.permute.xlu0 %47 }
  0x85   :  { %v67_v24 = vsel %vm65_vm4, %v64_v19, %v50_v21  ;;  %v66_v25 = vsel %vm65_vm4, %v63_v20, %v48_v22  ;;  %v120_v19 = vmax.f32 %v118_v14, 0.0 }
  0x86   :  { %v69_v28 = vmul.f32 %v67_v24, %v18_v17  ;;  %v68_v29 = vmul.f32 %v66_v25, %v17_v18 }
  0x87   :  { %v122_v23 = vsub.f32 %v399_v31, %v120_v19 }
  0x88   :  { %72 = vst.msk [vmem:[#allocation2 + $0x8] sm:$0xff] %vm70_vm5, %v69_v28  ;;  %71 = vst.msk [vmem:[#allocation2] sm:$0xff] %vm70_vm5, %v68_v29  ;;  %v178_v34 = vsub.f32 %v69_v28, %v18_v17  ;;  %v177_v35 = vsub.f32 %v68_v29, %v17_v18  ;;  %v164_v17 = vrot.slane %v160_v13, 4  ;;  %v119_v18 = vmax.f32 %v108_v6, %v114_v15 }
  0x89   :  { %124 = vst.msk [vmem:[%s483_s3] sm:$0xff] %vm53_vm0, %v122_v23 }
  0x8a   :  { %v406_v38 = vmul.f32 %v178_v34, %v178_v34  ;;  %v408_v39 = vmul.f32 %v177_v35, %v177_v35  ;;  %v165_v20 = vsel %vm111_vm10, %v163_v16, %v164_v17  ;;  %v168_v21 = vsel %vm111_vm10, %v164_v17, 15.0 }
  0x8b   :  { %v121_v22 = vmax.f32 %v119_v18, %v118_v14  ;;  %v169_v24 = vmin.f32 %v159_v12, %v165_v20  ;;  %v170_v25 = vmin.f32 %v160_v13, %v168_v21  ;;  %v220_v34 = vsel %vm53_vm0, %v395_v26, 0.0 }
  0x8c   :  { %185 = vrot.lane.b32.xlu1 %v406_v38, %s345_s0  ;;  %183 = vrot.lane.b32.xlu0 %v408_v39, %s345_s0  ;;  %v221_v35 = vsel %vm53_vm0, %v397_v27, 0.0 }
  0x8d   :  { %v123_v28 = vsub.f32 %v403_v36, %v121_v22  ;;  %v171_v29 = vmin.f32 %v169_v24, %v170_v25  ;;  %v172_v30 = vmin.f32 %v170_v25, 15.0  ;;  %v222_v37 = vadd.f32 %v221_v35, %v220_v34 }
  0x8f   :  { %125 = vst.msk [vmem:[%s483_s3 + $0x8] sm:$0xff] %vm53_vm0, %v123_v28  ;;  %v173_v32 = vsub.f32 %v171_v29, %v399_v31  ;;  %v174_v33 = vsub.f32 %v172_v30, %v403_v36  ;;  %s346_s3 = smov [#allocation2]  }
  0x91   :  { %175 = vst.msk [vmem:[%s484_s4] sm:$0xff] %vm53_vm0, %v173_v32  ;;  %176 = vst.msk [vmem:[%s484_s4 + $0x8] sm:$0xff] %vm53_vm0, %v174_v33  ;;  %s242_s4 = sshll.u32 %s346_s3, 4  ;;  %s243_s4 = int_to_ptr.vmem [resolvable:$true] %s242_s4 }
  0x92   :  { %s292_s13 = scalar_lea.vmem %s243_s4, 256  ;;  %p297_p1 = scmp.lt.s32.totalorder %s243_s4, %s243_s4 }
  0x93   :  { %p293_p0 = scmp.ne.s32.totalorder %s243_s4, %s292_s13  ;;  %p298_p2 = scmp.lt.s32.totalorder %s292_s13, %s292_s13 }
  0x95   :  { %p299_p3 = por %p298_p2, %p297_p1 }
  0x97   :  { %p300_p4 = pnand %p299_p3, %p293_p0 }
  0xb0   :  { %223 = vadd.xlane.f32.xlu1 %v222_v37 }
  0xfe   :  { %v186_v31 = vpop.permute.xlu1 %185  ;;  %v184_v36 = vpop.permute.xlu0 %183 }
  0xff   :  { %v190_v40 = vadd.f32 %v186_v31, %v406_v38  ;;  %v189_v41 = vadd.f32 %v184_v36, %v408_v39 }
 0x101   :  { %288 = vrsqrt.f32 %v190_v40  ;;  %vm200_vm11 = vcmp.eq.f32.partialorder %v190_v40, inf  ;;  %v203_v46 = vand.u32 2147483648, %v190_v40  ;;  %vm193_vm12 = vcmp.eq.f32.partialorder %v189_v41, inf }
 0x102   :  { %290 = vrsqrt.f32 %v189_v41  ;;  %v196_v47 = vand.u32 2147483648, %v189_v41  ;;  %vm202_vm13 = vcmp.eq.f32.partialorder %v190_v40, 0.0  ;;  %vm195_vm14 = vcmp.eq.f32.partialorder %v189_v41, 0.0 }
 0x10b   :  { %v289_v42 = vpop.eup %288 }
 0x10c   :  { %v291_v43 = vpop.eup %290  ;;  %v199_v44 = vmul.f32 %v289_v42, %v190_v40 }
 0x10d   :  { %v192_v45 = vmul.f32 %v291_v43, %v189_v41 }
 0x10e   :  { %v201_v48 = vsel %vm200_vm11, %v190_v40, %v199_v44 }
 0x10f   :  { %v194_v49 = vsel %vm193_vm12, %v189_v41, %v192_v45  ;;  %v204_v50 = vsel %vm202_vm13, %v203_v46, %v201_v48 }
 0x110   :  { %v197_v51 = vsel %vm195_vm14, %v196_v47, %v194_v49  ;;  %v206_v38 = vmul.f32 %v204_v50, %v397_v27 }
 0x111   :  { %v205_v39 = vmul.f32 %v197_v51, %v395_v26 }
 0x112   :  { %v208_v52 = vsel %vm53_vm0, %v206_v38, 0.0 }
 0x113   :  { %v207_v53 = vsel %vm53_vm0, %v205_v39, 0.0 }
 0x114   :  { %v209_v54 = vadd.f32 %v208_v52, %v207_v53 }
 0x116   :  { %210 = vadd.xlane.f32.xlu0 %v209_v54 }
 0x117   :  { %303 = shalt.err (!%p300_p4)
}
 0x118   :  { %s304_s16 = scalar_lea.hbm %s482_s2, 256 }
 0x119   :  { %p305_p5 = scmp.ne.s32.totalorder %s482_s2, %s304_s16  ;;  %p308_p6 = scmp.lt.u32.totalorder %s304_s16, %s482_s2 }
 0x11b   :  { %p310_p7 = pnand %p308_p6, %p305_p5 }
 0x11d   :  { %313 = shalt.err (!%p310_p7)
}
 0x11e   :  { %s347_s22 = smov 128   ;;  %s348_s25 = smov [#allocation4]   ;;  %vm233_vm15 = vcmask 7168   ;;  %vm235_vm0 = vcmask 8192  }
 0x11f   :  { %248 = dma.vmem_to_hbm [thread:$0]  %s243_s4, 256, %s482_s2, [#allocation3], %s347_s22, %s347_s22, %s341_s21  }
 0x120   :  { %s259_s26 = sshll.u32 %s348_s25, 4  ;;  %s260_s26 = int_to_ptr.vmem [resolvable:$true] %s259_s26 }
 0x121   :  { %s314_s21 = scalar_lea.vmem %s260_s26, 16  ;;  %s318_s27 = scalar_lea.vmem %s260_s26, 32 }
 0x122   :  { %p315_p8 = scmp.ne.s32.totalorder %s260_s26, %s314_s21  ;;  %p319_p9 = scmp.lt.s32.totalorder %s260_s26, %s260_s26 }
 0x123   :  { %p320_p10 = scmp.lt.s32.totalorder %s318_s27, %s314_s21 }
 0x125   :  { %p321_p11 = por %p320_p10, %p319_p9 }
 0x127   :  { %p322_p12 = pnand %p321_p11, %p315_p8 }
 0x13d   :  { %v224_v26 = vpop.xlane.xlu1 %223 }
 0x13e   :  { %v225_v27 = vrot.slane %v224_v26, 4 }
 0x140   :  { %v226_v55 = vadd.f32 %v225_v27, %v224_v26 }
 0x142   :  { %v227_v56 = vrot.slane %v226_v55, 2 }
 0x144   :  { %v228_v60 = vadd.f32 %v227_v56, %v226_v55 }
 0x146   :  { %v229_v63 = vrot.slane %v228_v60, 1 }
 0x148   :  { %v230_v2 = vadd.f32 %v229_v63, %v228_v60 }
 0x1a3   :  { %v211_v57 = vpop.xlane.xlu0 %210 }
 0x1a4   :  { %v212_v58 = vrot.slane %v211_v57, 4 }
 0x1a6   :  { %v213_v59 = vadd.f32 %v212_v58, %v211_v57 }
 0x1a8   :  { %v214_v61 = vrot.slane %v213_v59, 2 }
 0x1aa   :  { %v215_v62 = vadd.f32 %v214_v61, %v213_v59 }
 0x1ac   :  { %v216_v0 = vrot.slane %v215_v62, 1 }
 0x1ae   :  { %v217_v1 = vadd.f32 %v216_v0, %v215_v62 }
 0x1b0   :  { %275 = vpush %v217_v1 }
 0x1b1   :  { %277 = vpush %v230_v2 }
 0x1e1   :  { %s276_s1 = spop %275 }
 0x1e2   :  { %v219_v3 = vstv %s276_s1  ;;  %s278_s2 = spop %277 }
 0x1e3   :  { %v232_v4 = vstv %s278_s2 }
 0x1e4   :  { %v234_v5 = vsel %vm233_vm15, %v219_v3, %v232_v4 }
 0x1e5   :  { %236 = vst.msk [vmem:[#allocation4] sm:$0x1] %vm235_vm0, %v234_v5 }
 0x1e6   :  { %325 = shalt.err (!%p322_p12)
}
 0x1e7   :  { %s326_s0 = scalar_lea.hbm %s485_s5, 16 }
 0x1e8   :  { %p327_p13 = scmp.ne.s32.totalorder %s485_s5, %s326_s0  ;;  %p330_p0 = scmp.lt.u32.totalorder %s326_s0, %s485_s5 }
 0x1ea   :  { %p332_p1 = pnand %p330_p0, %p327_p13 }
 0x1ec   :  { %335 = shalt.err (!%p332_p1)
}
 0x1ed   :  { %262 = dma.vmem_to_hbm [thread:$0]  %s260_s26, 16, %s485_s5, [#allocation5]  }
 0x1ee   :  { %336 = dma.done.wait [#allocation3], 256  }
 0x1ef   :  { %337 = vsyncadd [#allocation3], 4294967040 }
 0x1f0   :  { %338 = dma.done.wait [#allocation5], 16  }
 0x1f1   :  { %339 = vsyncadd [#allocation5], 4294967280 }
 0x1f2   :  { %273 = vsyncpa [#allocation3], 1 }
 0x1f3   :  { %274 = vsyncpa [#allocation5], 1 }

</bundles_post_ra>
